<compile_context>
chip_gen: v7x
topology: tpu7x:2x2x1
jax: 0.10.0
libtpu: 0.0.40
codegen_flags: <defaults>
</compile_context>

<pallas_src>
import functools

import jax
import jax.numpy as jnp
from jax.experimental import pallas as pl
from jax.experimental.pallas import tpu as pltpu


def _childsum_lstm_kernel(x_ref, cc_ref, ch_ref, m_ref,
                          w4_ref, b4_ref, wfh_ref, bfh_ref,
                          out_ref, *, mem_dim):
    M = mem_dim
    N, Bt, _ = cc_ref.shape          # children, batch-tile rows, mem_dim
    mm_dtype = w4_ref.dtype          # matmul operand dtype (f32 or bf16); accum is f32

    child_c = cc_ref[...]                                    # (N, Bt, M)
    child_h = ch_ref[...]                                    # (N, Bt, M)
    # Hoisted mask lane-splat: one broadcast reused for both masked products.
    m_b = jnp.broadcast_to(m_ref[...], (N, Bt, M))           # (N, Bt, M)

    # child_h_sum over children: single VPU tree reduction over the N sublane blocks.
    h_sum = jnp.sum(child_h * m_b, axis=0)                   # (Bt, M)

    # Fused preactivation: one MXU push.  RHS rows 0..D-1 = [w_ioux | w_fx],
    # rows D..D+M-1 = [w_iouh | 0]; biases folded into b4.  Result is one
    # 128-lane-wide tile at M = 32.
    lhs = jnp.concatenate([x_ref[...], h_sum], axis=-1)      # (Bt, D+M)
    pre4 = (jnp.dot(lhs.astype(mm_dtype), w4_ref[...],
                    preferred_element_type=jnp.float32)
            + b4_ref[...])                                   # (Bt, 4M)

    i = jax.nn.sigmoid(pre4[:, :M])
    o = jax.nn.sigmoid(pre4[:, M:2 * M])
    u = jnp.tanh(pre4[:, 2 * M:3 * M])
    fx = pre4[:, 3 * M:]                                     # (Bt, M)

    # Forget-gate hidden contribution for all children in one (N*Bt, M) MXU matmul
    # (leading-dim merge: no tile-boundary crossing when Bt % 8 == 0).
    fh = (jnp.dot(child_h.reshape(N * Bt, M).astype(wfh_ref.dtype), wfh_ref[...],
                  preferred_element_type=jnp.float32)
          + bfh_ref[...]).reshape(N, Bt, M)

    # One contiguous EUP sigmoid region + one VPU tree reduction over children.
    fc_sum = jnp.sum(jax.nn.sigmoid(fh + fx[None, :, :]) * (child_c * m_b), axis=0)

    c = i * u + fc_sum                                       # (Bt, M)
    h = o * jnp.tanh(c)                                      # (Bt, M)

    # Direct sub-stores; skip the concat lane-merge (store is masked when 2M < 128).
    out_ref[:, :M] = c.astype(out_ref.dtype)
    out_ref[:, M:] = h.astype(out_ref.dtype)


def pack_params(params, *, mem_dim, dtype=jnp.float32):
    """One-time packing: stack both preactivation weights into one (D+M, 4M) RHS,
    fold all biases.  Pass dtype=jnp.bfloat16 for the large-batch MXU path (f32 accum
    is kept in-kernel; biases / elementwise math stay f32)."""
    M = mem_dim
    wd = params["w_ioux"].dtype
    top = jnp.concatenate([params["w_ioux"], params["w_fx"]], axis=1)           # (D, 4M)
    bot = jnp.concatenate([params["w_iouh"], jnp.zeros((M, M), wd)], axis=1)    # (M, 4M)
    w4 = jnp.concatenate([top, bot], axis=0).astype(dtype)                      # (D+M, 4M)
    b4 = jnp.concatenate([params["b_ioux"] + params["b_iouh"], params["b_fx"]],
                         axis=1).astype(jnp.float32)                            # (1, 4M)
    return dict(w4=w4, b4=b4,
                w_fh=params["w_fh"].astype(dtype),
                b_fh=params["b_fh"].astype(jnp.float32))


def childsum_lstm_cell(x, x_c, x_m_c, packed, *, mem_dim, block_b=None):
    """Pallas forward of ChildSumLSTMCell. Returns concat([c, h], -1), shape (B, 2*mem_dim).

    block_b=None  -> single gridless invocation (small batches of tree nodes).
    block_b=<int> -> 1-D parallel grid over B tiles (many nodes per call; both TCs on v7x).
    """
    B, N, two_m = x_c.shape
    M = mem_dim
    D = x.shape[1]
    assert two_m == 2 * M
    assert N >= 1, "cell expects at least one child slot (mask zero-pads leaves)"
    assert B % 8 == 0, "batch must be a multiple of 8 (sublane tile)"
    # TODO(synk): add a padding path for B % 8 != 0 / ragged last B tile instead of asserting.

    # Split cell/hidden and go children-major in the wrapper; XLA fuses the split into
    # the transpose copy, so both halves reach the kernel at lane offset 0.
    child_c = jnp.swapaxes(x_c[..., :M], 0, 1)                  # (N, B, M)
    child_h = jnp.swapaxes(x_c[..., M:], 0, 1)                  # (N, B, M)
    mask = jnp.swapaxes(x_m_c, 0, 1).astype(jnp.float32)        # (N, B, 1)

    kernel = functools.partial(_childsum_lstm_kernel, mem_dim=M)
    inputs = (x, child_c, child_h, mask,
              packed["w4"], packed["b4"], packed["w_fh"], packed["b_fh"])
    out_shape = jax.ShapeDtypeStruct((B, 2 * M), jnp.float32)

    if block_b is None or block_b >= B:
        # Small-batch path: one invocation, everything VMEM-resident (a grid would only
        # add ~0.35 us/step overhead at these sizes).
        vmem = pl.BlockSpec(memory_space=pltpu.MemorySpace.VMEM)
        return pl.pallas_call(
            kernel,
            out_shape=out_shape,
            in_specs=[vmem] * len(inputs),
            out_specs=vmem,
        )(*inputs)

    assert block_b % 8 == 0 and B % block_b == 0, "block_b must tile B in sublane multiples"
    grid = (B // block_b,)
    return pl.pallas_call(
        kernel,
        out_shape=out_shape,
        grid_spec=pltpu.PrefetchScalarGridSpec(
            num_scalar_prefetch=0,
            grid=grid,
            in_specs=[
                pl.BlockSpec((block_b, D), lambda i: (i, 0)),
                pl.BlockSpec((N, block_b, M), lambda i: (0, i, 0)),
                pl.BlockSpec((N, block_b, M), lambda i: (0, i, 0)),
                pl.BlockSpec((N, block_b, 1), lambda i: (0, i, 0)),
                # Packed weights / biases stay resident across all B tiles.
                pl.BlockSpec((D + M, 4 * M), lambda i: (0, 0)),
                pl.BlockSpec((1, 4 * M), lambda i: (0, 0)),
                pl.BlockSpec((M, M), lambda i: (0, 0)),
                pl.BlockSpec((1, M), lambda i: (0, 0)),
            ],
            out_specs=pl.BlockSpec((block_b, 2 * M), lambda i: (i, 0)),
        ),
        compiler_params=pltpu.CompilerParams(
            dimension_semantics=("parallel",)),
    )(*inputs)


def init_params(key, in_dim, mem_dim):
    """Deterministic init matching nn.Linear shapes (weights stored as (in, out))."""
    def linear(k, fan_in, fan_out):
        kw, kb = jax.random.split(k)
        bound = 1.0 / (fan_in ** 0.5)
        w = jax.random.uniform(kw, (fan_in, fan_out), jnp.float32, -bound, bound)
        b = jax.random.uniform(kb, (1, fan_out), jnp.float32, -bound, bound)
        return w, b

    k1, k2, k3, k4 = jax.random.split(key, 4)
    w_ioux, b_ioux = linear(k1, in_dim, 3 * mem_dim)
    w_iouh, b_iouh = linear(k2, mem_dim, 3 * mem_dim)
    w_fx, b_fx = linear(k3, in_dim, mem_dim)
    w_fh, b_fh = linear(k4, mem_dim, mem_dim)
    return dict(w_ioux=w_ioux, b_ioux=b_ioux, w_iouh=w_iouh, b_iouh=b_iouh,
                w_fx=w_fx, b_fx=b_fx, w_fh=w_fh, b_fh=b_fh)


def reference(x, x_c, x_m_c, params, *, mem_dim):
    """Pure-JAX replication of the PyTorch forward (for verification)."""
    M = mem_dim
    x_c_s, x_c_h = x_c[..., :M], x_c[..., M:]
    child_h_sum = jnp.sum(x_c_h * x_m_c, axis=1)
    iou = (x @ params["w_ioux"] + params["b_ioux"]
           + child_h_sum @ params["w_iouh"] + params["b_iouh"])
    i = jax.nn.sigmoid(iou[:, :M])
    o = jax.nn.sigmoid(iou[:, M:2 * M])
    u = jnp.tanh(iou[:, 2 * M:])
    fh = jnp.einsum("bnm,mk->bnk", x_c_h, params["w_fh"]) + params["b_fh"]
    fx = x @ params["w_fx"] + params["b_fx"]
    f = jax.nn.sigmoid(fh + fx[:, None, :])
    fc = f * x_c_s
    c = i * u + jnp.sum(fc * x_m_c, axis=1)
    h = o * jnp.tanh(c)
    return jnp.concatenate([c, h], axis=-1)


if __name__ == "__main__":
    in_dim, mem_dim = 32, 32

    key = jax.random.PRNGKey(0)
    kx, kc, km, kp = jax.random.split(key, 4)
    params = init_params(kp, in_dim, mem_dim)
    packed = pack_params(params, mem_dim=mem_dim)   # one-time weight packing (f32)

    # --- small-batch path: gridless, everything VMEM-resident ---
    B, N = 8, 4
    x = jax.random.normal(kx, (B, in_dim), jnp.float32)
    x_c = jax.random.normal(kc, (B, N, 2 * mem_dim), jnp.float32)
    x_m_c = (jax.random.uniform(km, (B, N, 1)) > 0.3).astype(jnp.float32)

    out = jax.block_until_ready(
        childsum_lstm_cell(x, x_c, x_m_c, packed, mem_dim=mem_dim))
    ref = reference(x, x_c, x_m_c, params, mem_dim=mem_dim)
    assert out.shape == (B, 2 * mem_dim)
    assert jnp.allclose(out, ref, atol=1e-4, rtol=1e-4), "gridless mismatch vs reference"

    # --- large-batch path: parallel grid over B tiles (both TCs on v7x) ---
    B2 = 32
    kx2, kc2, km2 = jax.random.split(jax.random.PRNGKey(1), 3)
    x2 = jax.random.normal(kx2, (B2, in_dim), jnp.float32)
    x_c2 = jax.random.normal(kc2, (B2, N, 2 * mem_dim), jnp.float32)
    x_m_c2 = (jax.random.uniform(km2, (B2, N, 1)) > 0.3).astype(jnp.float32)

    out2 = jax.block_until_ready(
        childsum_lstm_cell(x2, x_c2, x_m_c2, packed, mem_dim=mem_dim, block_b=8))
    ref2 = reference(x2, x_c2, x_m_c2, params, mem_dim=mem_dim)
    assert jnp.allclose(out2, ref2, atol=1e-4, rtol=1e-4), "gridded mismatch vs reference"

    print("KERNEL_OK")
</pallas_src>

<mosaic_0001>
module attributes {stable_mosaic.version = 11 : i64} {
  func.func @_childsum_lstm_kernel(%arg0: memref<8x32xf32, #tpu.memory_space<vmem>>, %arg1: memref<4x8x32xf32, #tpu.memory_space<vmem>>, %arg2: memref<4x8x32xf32, #tpu.memory_space<vmem>>, %arg3: memref<4x8x1xf32, #tpu.memory_space<vmem>>, %arg4: memref<64x128xf32, #tpu.memory_space<vmem>>, %arg5: memref<1x128xf32, #tpu.memory_space<vmem>>, %arg6: memref<32x32xf32, #tpu.memory_space<vmem>>, %arg7: memref<1x32xf32, #tpu.memory_space<vmem>>, %arg8: memref<8x64xf32, #tpu.memory_space<vmem>>) attributes {dimension_semantics = [], scalar_prefetch = 0 : i64, scratch_operands = 0 : i64, tpu.core_type = #tpu.core_type<tc>} {
    %c0 = arith.constant 0 : index
    %c0_0 = arith.constant 0 : index
    %c0_1 = arith.constant 0 : index
    %0 = vector.load %arg1[%c0, %c0_0, %c0_1] : memref<4x8x32xf32, #tpu.memory_space<vmem>>, vector<4x8x32xf32>
    %c0_2 = arith.constant 0 : index
    %c0_3 = arith.constant 0 : index
    %c0_4 = arith.constant 0 : index
    %1 = vector.load %arg2[%c0_2, %c0_3, %c0_4] : memref<4x8x32xf32, #tpu.memory_space<vmem>>, vector<4x8x32xf32>
    %c0_5 = arith.constant 0 : index
    %c0_6 = arith.constant 0 : index
    %c0_7 = arith.constant 0 : index
    %2 = vector.load %arg3[%c0_5, %c0_6, %c0_7] : memref<4x8x1xf32, #tpu.memory_space<vmem>>, vector<4x8x1xf32>
    %3 = vector.shape_cast %2 : vector<4x8x1xf32> to vector<4x8x1xf32>
    %4 = vector.broadcast %3 : vector<4x8x1xf32> to vector<4x8x32xf32>
    %5 = arith.mulf %1, %4 : vector<4x8x32xf32>
    %cst = arith.constant dense<0.000000e+00> : vector<8x32xf32>
    %6 = vector.multi_reduction <add>, %5, %cst [0] : vector<4x8x32xf32> to vector<8x32xf32>
    %c0_8 = arith.constant 0 : index
    %c0_9 = arith.constant 0 : index
    %7 = vector.load %arg0[%c0_8, %c0_9] : memref<8x32xf32, #tpu.memory_space<vmem>>, vector<8x32xf32>
    %8 = tpu.concatenate %7, %6 in 1 : vector<8x32xf32>, vector<8x32xf32> -> vector<8x64xf32>
    %c0_10 = arith.constant 0 : index
    %c0_11 = arith.constant 0 : index
    %9 = vector.load %arg4[%c0_10, %c0_11] : memref<64x128xf32, #tpu.memory_space<vmem>>, vector<64x128xf32>
    %cst_12 = arith.constant dense<0.000000e+00> : vector<8x128xf32>
    %10 = tpu.matmul %8, %9, %cst_12 {dimension_numbers = #tpu.dot_dimension_numbers<[1], [0], [0], [1], [0, 0, 1, 1], [], []>} : vector<8x64xf32>, vector<64x128xf32>, vector<8x128xf32> -> vector<8x128xf32>
    %c0_13 = arith.constant 0 : index
    %c0_14 = arith.constant 0 : index
    %11 = vector.load %arg5[%c0_13, %c0_14] : memref<1x128xf32, #tpu.memory_space<vmem>>, vector<1x128xf32>
    %12 = vector.broadcast %11 : vector<1x128xf32> to vector<8x128xf32>
    %13 = arith.addf %10, %12 : vector<8x128xf32>
    %14 = vector.extract_strided_slice %13 {offsets = [0, 0], sizes = [8, 32], strides = [1, 1]} : vector<8x128xf32> to vector<8x32xf32>
    %15 = arith.negf %14 : vector<8x32xf32>
    %16 = math.exp %15 : vector<8x32xf32>
    %cst_15 = arith.constant 1.000000e+00 : f32
    %17 = vector.broadcast %cst_15 : f32 to vector<8x32xf32>
    %18 = arith.addf %17, %16 : vector<8x32xf32>
    %19 = arith.divf %17, %18 : vector<8x32xf32>
    %20 = vector.extract_strided_slice %13 {offsets = [0, 32], sizes = [8, 32], strides = [1, 1]} : vector<8x128xf32> to vector<8x32xf32>
    %21 = arith.negf %20 : vector<8x32xf32>
    %22 = math.exp %21 : vector<8x32xf32>
    %cst_16 = arith.constant 1.000000e+00 : f32
    %23 = vector.broadcast %cst_16 : f32 to vector<8x32xf32>
    %24 = arith.addf %23, %22 : vector<8x32xf32>
    %25 = arith.divf %23, %24 : vector<8x32xf32>
    %26 = vector.extract_strided_slice %13 {offsets = [0, 64], sizes = [8, 32], strides = [1, 1]} : vector<8x128xf32> to vector<8x32xf32>
    %27 = math.tanh %26 : vector<8x32xf32>
    %28 = vector.extract_strided_slice %13 {offsets = [0, 96], sizes = [8, 32], strides = [1, 1]} : vector<8x128xf32> to vector<8x32xf32>
    %29 = vector.shape_cast %1 : vector<4x8x32xf32> to vector<32x32xf32>
    %c0_17 = arith.constant 0 : index
    %c0_18 = arith.constant 0 : index
    %30 = vector.load %arg6[%c0_17, %c0_18] : memref<32x32xf32, #tpu.memory_space<vmem>>, vector<32x32xf32>
    %cst_19 = arith.constant dense<0.000000e+00> : vector<32x32xf32>
    %31 = tpu.matmul %29, %30, %cst_19 {dimension_numbers = #tpu.dot_dimension_numbers<[1], [0], [0], [1], [0, 0, 1, 1], [], []>} : vector<32x32xf32>, vector<32x32xf32>, vector<32x32xf32> -> vector<32x32xf32>
    %c0_20 = arith.constant 0 : index
    %c0_21 = arith.constant 0 : index
    %32 = vector.load %arg7[%c0_20, %c0_21] : memref<1x32xf32, #tpu.memory_space<vmem>>, vector<1x32xf32>
    %33 = vector.broadcast %32 : vector<1x32xf32> to vector<32x32xf32>
    %34 = arith.addf %31, %33 : vector<32x32xf32>
    %35 = vector.shape_cast %34 : vector<32x32xf32> to vector<4x8x32xf32>
    %36 = vector.shape_cast %28 : vector<8x32xf32> to vector<1x8x32xf32>
    %37 = vector.broadcast %36 : vector<1x8x32xf32> to vector<4x8x32xf32>
    %38 = arith.addf %35, %37 : vector<4x8x32xf32>
    %39 = arith.negf %38 : vector<4x8x32xf32>
    %40 = math.exp %39 : vector<4x8x32xf32>
    %cst_22 = arith.constant 1.000000e+00 : f32
    %41 = vector.broadcast %cst_22 : f32 to vector<4x8x32xf32>
    %42 = arith.addf %41, %40 : vector<4x8x32xf32>
    %43 = arith.divf %41, %42 : vector<4x8x32xf32>
    %44 = arith.mulf %0, %4 : vector<4x8x32xf32>
    %45 = arith.mulf %43, %44 : vector<4x8x32xf32>
    %cst_23 = arith.constant dense<0.000000e+00> : vector<8x32xf32>
    %46 = vector.multi_reduction <add>, %45, %cst_23 [0] : vector<4x8x32xf32> to vector<8x32xf32>
    %47 = arith.mulf %19, %27 : vector<8x32xf32>
    %48 = arith.addf %47, %46 : vector<8x32xf32>
    %49 = math.tanh %48 : vector<8x32xf32>
    %50 = arith.mulf %25, %49 : vector<8x32xf32>
    %c0_24 = arith.constant 0 : index
    %c0_25 = arith.constant 0 : index
    %51 = vector.load %arg8[%c0_24, %c0_25] : memref<8x64xf32, #tpu.memory_space<vmem>>, vector<8x32xf32>
    tpu.vector_store %arg8[%c0_24, %c0_25], %48 {strides = array<i32>} : memref<8x64xf32, #tpu.memory_space<vmem>>, vector<8x32xf32>,
    %c0_26 = arith.constant 0 : index
    %c32 = arith.constant 32 : index
    %52 = vector.load %arg8[%c0_26, %c32] : memref<8x64xf32, #tpu.memory_space<vmem>>, vector<8x32xf32>
    tpu.vector_store %arg8[%c0_26, %c32], %50 {strides = array<i32>} : memref<8x64xf32, #tpu.memory_space<vmem>>, vector<8x32xf32>,
    return
  }
}

</mosaic_0001>

<bundles_post_ra>
// kernel: tpu_custom_call.1
= control target key start
LH: loop header
LB: loop body
LE: loop exit
PB: predicated region body
PF: predicated region fallthrough
CT: control target
= control target key end

     0   :  { %13 = vsyncpa [#allocation3], 0  ;;  %s845_s0 = inlined_call_operand.hbm [shape: f32[8,32], index: 0, kind: input, shape index: {}]   ;;  %s846_s1 = inlined_call_operand.vmem [shape: f32[4,8,32], index: 1, kind: input, shape index: {}]   ;;  %s847_s2 = inlined_call_operand.hbm [shape: f32[4,8,32], index: 2, kind: input, shape index: {}]   ;;  %s848_s3 = inlined_call_operand.vmem [shape: f32[4,8,1], index: 3, kind: input, shape index: {}]   ;;  %s849_s4 = inlined_call_operand.hbm [shape: f32[64,128], index: 4, kind: input, shape index: {}]   ;;  %s850_s5 = inlined_call_operand.vmem [shape: f32[1,128], index: 5, kind: input, shape index: {}]   ;;  %s851_s6 = inlined_call_operand.hbm [shape: f32[32,32], index: 6, kind: input, shape index: {}]   ;;  %s852_s7 = inlined_call_operand.vmem [shape: f32[1,32], index: 7, kind: input, shape index: {}]   ;;  %s853_s8 = inlined_call_operand.hbm [shape: f32[8,64], index: 8, kind: output, shape index: {}]  }
   0x1   :  { %14 = vsyncpa [#allocation6], 0 }
   0x2   :  { %15 = vsyncpa [#allocation9], 0 }
   0x3   :  { %16 = vsyncpa [#allocation4], 0  ;;  %s655_s27 = smov [#allocation5]   ;;  %s537_s9 = scalar_lea.hbm %s847_s2, 512 }
   0x4   :  { %s34_s28 = sshll.u32 %s655_s27, 4  ;;  %p538_p0 = scmp.ne.s32.totalorder %s847_s2, %s537_s9  ;;  %s35_s28 = int_to_ptr.vmem [resolvable:$true] %s34_s28 }
   0x5   :  { %p541_p1 = scmp.lt.u32.totalorder %s537_s9, %s847_s2 }
   0x7   :  { %p543_p2 = pnand %p541_p1, %p538_p0 }
   0x9   :  { %546 = shalt.err (!%p543_p2)
}
   0xa   :  { %s547_s14 = scalar_lea.vmem %s35_s28, 512  ;;  %p552_p4 = scmp.lt.s32.totalorder %s35_s28, %s35_s28 }
   0xb   :  { %p548_p3 = scmp.ne.s32.totalorder %s35_s28, %s547_s14  ;;  %p553_p5 = scmp.lt.s32.totalorder %s547_s14, %s547_s14 }
   0xd   :  { %p554_p6 = por %p553_p5, %p552_p4 }
   0xf   :  { %p555_p7 = pnand %p554_p6, %p548_p3 }
  0x11   :  { %558 = shalt.err (!%p555_p7)
}
  0x12   :  { %s656_s15 = smov 128   ;;  %s657_s16 = smov 8  }
  0x13   :  { %40 = dma.hbm_to_vmem [thread:$0]  %s847_s2, 512, %s35_s28, [#allocation6], %s656_s15, %s656_s15, %s657_s16  }
  0x14   :  { %s658_s19 = smov [#allocation2]   ;;  %s659_s21 = smov [#allocation7]  }
  0x15   :  { %s23_s20 = sshll.u32 %s658_s19, 4  ;;  %s48_s22 = sshll.u32 %s659_s21, 4  ;;  %s24_s20 = int_to_ptr.vmem [resolvable:$true] %s23_s20  ;;  %s49_s22 = int_to_ptr.vmem [resolvable:$true] %s48_s22 }
  0x16   :  { %s559_s25 = scalar_lea.hbm %s845_s0, 128 }
  0x17   :  { %p560_p8 = scmp.ne.s32.totalorder %s845_s0, %s559_s25  ;;  %p563_p9 = scmp.lt.u32.totalorder %s559_s25, %s845_s0 }
  0x19   :  { %p565_p10 = pnand %p563_p9, %p560_p8 }
  0x1b   :  { %568 = shalt.err (!%p565_p10)
}
  0x1c   :  { %s569_s2 = scalar_lea.vmem %s24_s20, 128  ;;  %p574_p12 = scmp.lt.s32.totalorder %s24_s20, %s24_s20 }
  0x1d   :  { %p570_p11 = scmp.ne.s32.totalorder %s24_s20, %s569_s2  ;;  %p575_p13 = scmp.lt.s32.totalorder %s569_s2, %s569_s2 }
  0x1f   :  { %p576_p0 = por %p575_p13, %p574_p12 }
  0x21   :  { %p577_p1 = pnand %p576_p0, %p570_p11 }
  0x23   :  { %580 = shalt.err (!%p577_p1)
}
  0x24   :  { %26 = dma.hbm_to_vmem [thread:$0]  %s845_s0, 128, %s24_s20, [#allocation3]  }
  0x25   :  { %s581_s12 = scalar_lea.hbm %s849_s4, 1024 }
  0x26   :  { %p582_p2 = scmp.ne.s32.totalorder %s849_s4, %s581_s12  ;;  %p585_p3 = scmp.lt.u32.totalorder %s581_s12, %s849_s4 }
  0x28   :  { %p587_p4 = pnand %p585_p3, %p582_p2 }
  0x2a   :  { %590 = shalt.err (!%p587_p4)
}
  0x2b   :  { %s591_s19 = scalar_lea.vmem %s49_s22, 1024  ;;  %p596_p6 = scmp.lt.s32.totalorder %s49_s22, %s49_s22 }
  0x2c   :  { %p592_p5 = scmp.ne.s32.totalorder %s49_s22, %s591_s19  ;;  %p597_p7 = scmp.lt.s32.totalorder %s591_s19, %s591_s19 }
  0x2e   :  { %p598_p8 = por %p597_p7, %p596_p6 }
  0x30   :  { %p599_p9 = pnand %p598_p8, %p592_p5 }
  0x32   :  { %602 = shalt.err (!%p599_p9)
}
  0x33   :  { %54 = dma.hbm_to_vmem [thread:$0]  %s849_s4, 1024, %s49_s22, [#allocation6], %s656_s15, %s656_s15, %s657_s16  }
  0x34   :  { %s660_s21 = smov [#allocation8]   ;;  %s603_s26 = scalar_lea.hbm %s851_s6, 512 }
  0x35   :  { %s62_s23 = sshll.u32 %s660_s21, 4  ;;  %p604_p10 = scmp.ne.s32.totalorder %s851_s6, %s603_s26  ;;  %s63_s23 = int_to_ptr.vmem [resolvable:$true] %s62_s23 }
  0x36   :  { %p607_p11 = scmp.lt.u32.totalorder %s603_s26, %s851_s6 }
  0x38   :  { %p609_p12 = pnand %p607_p11, %p604_p10 }
  0x3a   :  { %612 = shalt.err (!%p609_p12)
}
  0x3b   :  { %s613_s28 = scalar_lea.vmem %s63_s23, 512  ;;  %p618_p0 = scmp.lt.s32.totalorder %s63_s23, %s63_s23 }
  0x3c   :  { %p614_p13 = scmp.ne.s32.totalorder %s63_s23, %s613_s28  ;;  %p619_p1 = scmp.lt.s32.totalorder %s613_s28, %s613_s28 }
  0x3e   :  { %p620_p2 = por %p619_p1, %p618_p0 }
  0x40   :  { %p621_p3 = pnand %p620_p2, %p614_p13 }
  0x42   :  { %624 = shalt.err (!%p621_p3)
}
  0x43   :  { %68 = dma.hbm_to_vmem [thread:$0]  %s851_s6, 512, %s63_s23, [#allocation9], %s656_s15, %s656_s15, %s657_s16  }
  0x44   :  { %647 = dma.done.wait [#allocation3], 128  }
  0x45   :  { %648 = vsyncadd [#allocation3], 4294967168 }
  0x46   :  { %649 = dma.done.wait [#allocation6], 1536  }
  0x47   :  { %650 = vsyncadd [#allocation6], 4294965760 }
  0x48   :  { %651 = dma.done.wait [#allocation9], 512  }
  0x49   :  { %652 = vsyncadd [#allocation9], 4294966784  ;;  %v661_v0 = vmov 0   ;;  %v93_v1 = vld [vmem:[%s848_s3 + $0x10] sm:$0xff]  ;;  %v91_v2 = vld [vmem:[%s848_s3] sm:$0xff]  ;;  %vm119_vm0 = vcmask 261120  }
  0x4a   :  { %512 = vset.pattern.permute.xlu1 %v661_v0  ;;  %511 = vset.pattern.permute.xlu0 %v661_v0  ;;  %v94_v3 = vld [vmem:[%s848_s3 + $0x18] sm:$0xff]  ;;  %v92_v4 = vld [vmem:[%s848_s3 + $0x8] sm:$0xff]  ;;  %v134_v7 = vld [vmem:[#allocation7 + $0x8] sm:$0xff]  ;;  %v662_v9 = vmov 0.0|0.0   ;;  %vm663_vm1 = vmmov 0   ;;  %v664_v23 = vmov 0.0  }
  0x4b   :  { %107 = vperm.xlu1 %512, %v93_v1   ;;  %97 = vperm.xlu0 %511, %v91_v2   ;;  %v87_v5 = vld [vmem:[#allocation5] sm:$0xff]  ;;  %v135_v8 = vld [vmem:[#allocation7 + $0x10] sm:$0xff]  ;;  %v136_v11 = vld [vmem:[#allocation7 + $0x18] sm:$0xff]  ;;  %s665_s3 = smov 32   ;;  %vm148_vm2 = vcmask 523264   ;;  %s666_s18 = smov 64  }
  0x4c   :  { %472 = vmatprep.mubr.msk.f32.mxu1 %vm119_vm0, %v87_v5  ;;  %v133_v6 = vld [vmem:[#allocation7] sm:$0xff]  ;;  %478 = vmatprep.subr.bf16.mxu0 %v662_v9  ;;  %v482_v12 = vpack.c.bf16 %v136_v11, %v135_v8  ;;  %v138_v14 = vld [vmem:[#allocation7 + $0x28] sm:$0xff]  ;;  %v139_v16 = vld [vmem:[#allocation7 + $0x30] sm:$0xff]  ;;  %vm397_vm3 = vcmask 523520  }
  0x4d   :  { %v479_v10 = vpack.c.bf16 %v134_v7, %v133_v6  ;;  %v137_v13 = vld [vmem:[#allocation7 + $0x20] sm:$0xff]  ;;  %v140_v17 = vld [vmem:[#allocation7 + $0x38] sm:$0xff]  ;;  %v89_v21 = vld [vmem:[#allocation5 + $0x10] sm:$0xff]  ;;  %461 = vmatprep.mubr.msk.f32.mxu0 %vm663_vm1, %v664_v23 }
  0x4e   :  { %v485_v15 = vpack.c.bf16 %v138_v14, %v137_v13  ;;  %v488_v18 = vpack.c.bf16 %v140_v17, %v139_v16  ;;  %v88_v22 = vld [vmem:[#allocation5 + $0x8] sm:$0xff]  ;;  %v229_v24 = vld [vmem:[#allocation8] sm:$0xff]  ;;  %v231_v26 = vld [vmem:[#allocation8 + $0x10] sm:$0xff] }
  0x4f   :  { %112 = vperm.xlu1 %512, %v94_v3   ;;  %102 = vperm.xlu0 %511, %v92_v4   ;;  %v230_v25 = vld [vmem:[#allocation8 + $0x8] sm:$0xff]  ;;  %v232_v29 = vld [vmem:[#allocation8 + $0x18] sm:$0xff]  ;;  %v86_v23 = vld [vmem:[%s846_s1 + $0x18] sm:$0xff] }
  0x50   :  { %480 = vmatpush3.bf16.msra.mxu0 %v479_v10  ;;  %v490_v28 = vpack.c.bf16 %v230_v25, %v229_v24  ;;  %v90_v31 = vld [vmem:[#allocation5 + $0x18] sm:$0xff]  ;;  %v494_v33 = vpack.c.bf16 %v232_v29, %v231_v26 }
  0x51   :  { %481 = vmatprep.subr.bf16.mxu0 %v662_v9  ;;  %v127_v44 = vld [vmem:[#allocation2] sm:$0xff] }
  0x52   :  { %491 = vmatprep.subr.bf16.mxu1 %v490_v28  ;;  %v416_v51 = vld [vmem:[%s850_s5] ss:$0 sm:$0xff] }
  0x53   :  { %493 = vmatpush3.bf16.msra.mxu1 %v490_v28  ;;  %v419_v56 = vld [vmem:[%s852_s7] ss:$0 sm:$0xff] }
  0x54   :  { %483 = vmatpush3.bf16.msra.mxu0 %v482_v12  ;;  %495 = vmatprep.subr.bf16.mxu1 %v494_v33  ;;  %v83_v17 = vld [vmem:[%s846_s1] sm:$0xff] }
  0x55   :  { %484 = vmatprep.subr.bf16.mxu0 %v662_v9 }
  0x57   :  { %497 = vmatpush3.bf16.msra.mxu1 %v494_v33 }
  0x58   :  { %486 = vmatpush3.bf16.msra.mxu0 %v485_v15 }
  0x59   :  { %487 = vmatprep.subr.bf16.mxu0 %v662_v9 }
  0x5a   :  { %473 = vmatmul.mubr.msk.f32.vlgmr.msra.gmra.mrb[0].mxu1 %vm119_vm0, %v88_v22 }
  0x5b   :  { %475 = vmatprep.mubr.msk.f32.mxu1 %vm119_vm0, %v89_v21 }
  0x5c   :  { %489 = vmatpush3.bf16.msra.mxu0 %v488_v18  ;;  %v84_v18 = vld [vmem:[%s846_s1 + $0x8] sm:$0xff] }
  0x5e   :  { %476 = vmatmul.mubr.msk.f32.gmra.mrb[2].mxu1 %vm119_vm0, %v90_v31 }
  0xca   :  { %v783_v19 = vpop.permute.xlu1 %107  ;;  %v785_v20 = vpop.permute.xlu0 %97 }
  0xcb   :  { %v115_v27 = vmul.f32 %v785_v20, %v87_v5  ;;  %v117_v34 = vmul.f32 %v783_v19, %v89_v21  ;;  %v85_v21 = vld [vmem:[%s846_s1 + $0x10] sm:$0xff]  ;;  %s667_s1 = smov [#allocation10]  }
  0xcc   :  { %s405_s27 = sshll.u32 %s667_s1, 4  ;;  %s406_s27 = int_to_ptr.vmem [resolvable:$true] %s405_s27 }
  0xcd   :  { %v120_v36 = vsel %vm119_vm0, %v115_v27, 0.0  ;;  %v123_v40 = vsel %vm119_vm0, %v117_v34, 0.0  ;;  %v371_v27 = vmul.f32 %v783_v19, %v85_v21  ;;  %s625_s29 = scalar_lea.vmem %s406_s27, 128  ;;  %p630_p5 = scmp.lt.s32.totalorder %s406_s27, %s406_s27 }
  0xce   :  { %v788_v30 = vpop.permute.xlu1 %112  ;;  %v790_v32 = vpop.permute.xlu0 %102  ;;  %p626_p4 = scmp.ne.s32.totalorder %s406_s27, %s625_s29  ;;  %p631_p6 = scmp.lt.s32.totalorder %s625_s29, %s625_s29 }
  0xcf   :  { %v116_v35 = vmul.f32 %v790_v32, %v88_v22  ;;  %v118_v37 = vmul.f32 %v788_v30, %v90_v31  ;;  %v369_v22 = vmul.f32 %v785_v20, %v83_v17  ;;  %v370_v25 = vmul.f32 %v790_v32, %v84_v18 }
  0xd0   :  { %v372_v31 = vmul.f32 %v788_v30, %v86_v23  ;;  %p632_p7 = por %p631_p6, %p630_p5 }
  0xd1   :  { %v121_v38 = vsel %vm119_vm0, %v116_v35, 0.0  ;;  %v125_v42 = vsel %vm119_vm0, %v118_v37, 0.0 }
  0xd2   :  { %v122_v39 = vadd.f32 %v121_v38, %v120_v36  ;;  %p633_p8 = pnand %p632_p7, %p626_p4 }
  0xd4   :  { %v124_v41 = vadd.f32 %v123_v40, %v122_v39 }
  0xd6   :  { %v126_v43 = vadd.f32 %v125_v42, %v124_v41 }
  0xd8   :  { %129 = vrot.lane.b32.xlu0 %v126_v43, %s665_s3 }
 0x12d   :  { %v474_v47 = vpop.f32.mrb[0].mxu1 }
 0x12e   :  { %v318_v48 = vpop.f32.mrb[1].mxu1  ;;  %v324_v59 = vadd.f32 %v474_v47, %v419_v56 }
 0x12f   :  { %v319_v60 = vadd.f32 %v419_v56, %v318_v48 }
 0x131   :  { %v477_v49 = vpop.f32.mrb[2].mxu1 }
 0x132   :  { %v328_v50 = vpop.f32.mrb[3].mxu1  ;;  %v334_v57 = vadd.f32 %v477_v49, %v419_v56 }
 0x133   :  { %v329_v58 = vadd.f32 %v419_v56, %v328_v50 }
 0x14a   :  { %v130_v45 = vpop.permute.xlu0 %129 }
 0x14b   :  { %v132_v46 = vsel %vm119_vm0, %v127_v44, %v130_v45 }
 0x14c   :  { %462 = vmatmul.mubr.msk.f32.vlgmr.msra.gmra.mrb[0].mxu0 %vm148_vm2, %v132_v46 }
 0x21f   :  { %v218_v52 = vpop.f32.mrb[0].mxu0 }
 0x220   :  { %v219_v53 = vadd.f32 %v416_v51, %v218_v52  ;;  %v463_v54 = vpop.f32.mrb[1].mxu0 }
 0x222   :  { %513 = vtanh.f32 %v219_v53  ;;  %338 = vrot.lane.b32.xlu1 %v219_v53, %s665_s3  ;;  %v418_v6 = vmul.f32 -1.442695, %v219_v53 }
 0x22c   :  { %v514_v55 = vpop.eup %513 }
 0x22d   :  { %385 = vrot.lane.b32.xlu0 %v514_v55, %s666_s18 }
 0x294   :  { %v339_v61 = vpop.permute.xlu1 %338 }
 0x295   :  { %v341_v62 = vadd.f32 %v339_v61, %v319_v60  ;;  %v342_v63 = vadd.f32 %v339_v61, %v324_v59  ;;  %v343_v0 = vadd.f32 %v339_v61, %v329_v58  ;;  %v344_v1 = vadd.f32 %v339_v61, %v334_v57 }
 0x297   :  { %v424_v2 = vmul.f32 -1.442695, %v341_v62  ;;  %v425_v3 = vmul.f32 -1.442695, %v342_v63  ;;  %v426_v4 = vmul.f32 -1.442695, %v343_v0 }
 0x298   :  { %v427_v5 = vmul.f32 -1.442695, %v344_v1 }
 0x299   :  { %515 = vpow2.f32 %v424_v2 }
 0x29a   :  { %517 = vpow2.f32 %v425_v3 }
 0x29b   :  { %519 = vpow2.f32 %v426_v4 }
 0x29c   :  { %521 = vpow2.f32 %v427_v5 }
 0x29d   :  { %523 = vpow2.f32 %v418_v6 }
 0x29f   :  { %v386_v39 = vpop.permute.xlu0 %385 }
 0x2a3   :  { %v516_v7 = vpop.eup %515 }
 0x2a4   :  { %v518_v8 = vpop.eup %517  ;;  %v357_v9 = vadd.f32 1.0, %v516_v7 }
 0x2a5   :  { %v520_v10 = vpop.eup %519  ;;  %v358_v11 = vadd.f32 1.0, %v518_v8 }
 0x2a6   :  { %v522_v12 = vpop.eup %521  ;;  %v359_v13 = vadd.f32 1.0, %v520_v10  ;;  %525 = vrcp.f32 %v357_v9 }
 0x2a7   :  { %v524_v14 = vpop.eup %523  ;;  %v360_v15 = vadd.f32 1.0, %v522_v12  ;;  %527 = vrcp.f32 %v358_v11 }
 0x2a8   :  { %529 = vrcp.f32 %v359_v13  ;;  %v225_v16 = vadd.f32 1.0, %v524_v14 }
 0x2a9   :  { %531 = vrcp.f32 %v360_v15 }
 0x2aa   :  { %533 = vrcp.f32 %v225_v16 }
 0x2b0   :  { %v526_v24 = vpop.eup %525 }
 0x2b1   :  { %v528_v26 = vpop.eup %527  ;;  %v373_v28 = vmul.f32 %v526_v24, %v369_v22 }
 0x2b2   :  { %v530_v29 = vpop.eup %529  ;;  %v374_v33 = vmul.f32 %v528_v26, %v370_v25 }
 0x2b3   :  { %v532_v34 = vpop.eup %531  ;;  %v375_v35 = vmul.f32 %v530_v29, %v371_v27  ;;  %v377_v36 = vsel %vm119_vm0, %v373_v28, 0.0 }
 0x2b4   :  { %v376_v20 = vmul.f32 %v532_v34, %v372_v31  ;;  %v378_v37 = vsel %vm119_vm0, %v374_v33, 0.0  ;;  %v534_v41 = vpop.eup %533 }
 0x2b5   :  { %v379_v38 = vadd.f32 %v378_v37, %v377_v36  ;;  %v380_v40 = vsel %vm119_vm0, %v375_v35, 0.0  ;;  %v388_v43 = vmul.f32 %v534_v41, %v386_v39 }
 0x2b6   :  { %v382_v19 = vsel %vm119_vm0, %v376_v20, 0.0 }
 0x2b7   :  { %v381_v32 = vadd.f32 %v380_v40, %v379_v38 }
 0x2b9   :  { %v383_v42 = vadd.f32 %v382_v19, %v381_v32 }
 0x2bb   :  { %v389_v44 = vadd.f32 %v388_v43, %v383_v42 }
 0x2bd   :  { %535 = vtanh.f32 %v389_v44  ;;  %396 = vst.msk [vmem:[#allocation10] sm:$0xff] %vm119_vm0, %v389_v44 }
 0x2c7   :  { %v536_v30 = vpop.eup %535 }
 0x2c8   :  { %392 = vrot.lane.b32.xlu1 %v536_v30, %s665_s3 }
 0x33a   :  { %v393_v45 = vpop.permute.xlu1 %392 }
 0x33b   :  { %v395_v46 = vmul.f32 %v534_v41, %v393_v45 }
 0x33d   :  { %398 = vst.msk [vmem:[#allocation10] sm:$0xff] %vm397_vm3, %v395_v46 }
 0x33e   :  { %636 = shalt.err (!%p633_p8)
}
 0x33f   :  { %s637_s28 = scalar_lea.hbm %s853_s8, 128 }
 0x340   :  { %p638_p9 = scmp.ne.s32.totalorder %s853_s8, %s637_s28  ;;  %p641_p10 = scmp.lt.u32.totalorder %s637_s28, %s853_s8 }
 0x342   :  { %p643_p11 = pnand %p641_p10, %p638_p9 }
 0x344   :  { %646 = shalt.err (!%p643_p11)
}
 0x345   :  { %408 = dma.vmem_to_hbm [thread:$0]  %s406_s27, 128, %s853_s8, [#allocation4]  }
 0x346   :  { %653 = dma.done.wait [#allocation4], 128  }
 0x347   :  { %654 = vsyncadd [#allocation4], 4294967168 }
 0x348   :  { %412 = vsyncpa [#allocation3], 1 }
 0x349   :  { %413 = vsyncpa [#allocation6], 1 }
 0x34a   :  { %414 = vsyncpa [#allocation9], 1 }
 0x34b   :  { %415 = vsyncpa [#allocation4], 1 }

</bundles_post_ra>
